<compile_context>
chip_gen: v5e
topology: v5e:2x2
jax: 0.10.0
libtpu: 0.0.40
codegen_flags: <defaults>
</compile_context>

<pallas_src>
import functools

import jax
import jax.numpy as jnp
from jax.experimental import pallas as pl
from jax.experimental.pallas import tpu as pltpu


def _round_up(a, b):
    return ((a + b - 1) // b) * b


def _pick_tiling(n):
    """Return (tm, tk, n_pad); tm and tk divide n_pad."""
    if n <= 2048:
        # Single full-array block: adjacency resident per layer; int8-friendly pad.
        n_pad = _round_up(max(n, 32), 32)
        return n_pad, n_pad, n_pad
    # Streaming blocks: (512, 2048) int8 = 1 MiB per block (>= ~85% HBM roofline),
    # double-buffered 2 MiB -- independent of N.
    tm, tk = 512, 2048
    n_pad = _round_up(n, tk)  # tk is a multiple of tm
    return tm, tk, n_pad


def _vmem_limit_bytes():
    """Generation-aware scoped-VMEM cap (defaults are far below physical)."""
    try:
        kind = jax.devices()[0].device_kind.lower()
    except Exception:  # pragma: no cover - defensive
        kind = ""
    if "7" in kind:                      # v7x: 64 MiB physical per TensorCore
        return 56 * 1024 * 1024
    return 100 * 1024 * 1024             # v5e / v6e: 128 MiB physical


def _gcn_layer_kernel(adj_ref, xw_ref, dinv_ref, b_ref, out_ref, acc_ref, *,
                      apply_relu, apply_log_softmax):
    # adj_ref:  [TM, TK] int8 tile of (A + I), unnormalized (exact in int8)
    # xw_ref:   [TK, F]  f32  K-slice of D^{-1/2} * (X @ W)
    # dinv_ref: [TM, 1]  f32  row slice of D^{-1/2}
    # b_ref:    [1,  F]  f32  bias
    # acc_ref:  [TM, F]  f32  VMEM accumulator (persists across K steps)
    k = pl.program_id(1)

    @pl.when(k == 0)
    def _():
        acc_ref[...] = jnp.zeros_like(acc_ref)

    # int8 -> f32 upcast (exact for small integer counts), hidden under DMA slack.
    adj = adj_ref[...].astype(jnp.float32)
    acc_ref[...] += jnp.dot(adj, xw_ref[...],
                            preferred_element_type=jnp.float32)  # MXU, f32 acc

    @pl.when(k == pl.num_programs(1) - 1)
    def _():
        h = dinv_ref[...] * acc_ref[...] + b_ref[...]            # f32 epilogue
        if apply_relu:
            h = jnp.maximum(h, 0.0)
        if apply_log_softmax:
            m = jnp.max(h, axis=1, keepdims=True)
            z = h - m
            h = z - jnp.log(jnp.sum(jnp.exp(z), axis=1, keepdims=True))
        out_ref[...] = h


def _gcn_aggregate(adj_i8, xw_scaled, dinv_col, bias, *, tm, tk,
                   apply_relu=False, apply_log_softmax=False):
    """One GCN layer: dinv * ((A+I) @ xw_scaled) + bias, plus epilogue."""
    n_pad = adj_i8.shape[0]
    fout = xw_scaled.shape[1]
    kernel = functools.partial(_gcn_layer_kernel,
                               apply_relu=apply_relu,
                               apply_log_softmax=apply_log_softmax)
    return pl.pallas_call(
        kernel,
        out_shape=jax.ShapeDtypeStruct((n_pad, fout), jnp.float32),
        grid=(n_pad // tm, n_pad // tk),
        in_specs=[
            pl.BlockSpec((tm, tk), lambda i, k: (i, k)),     # adjacency tile (streamed)
            pl.BlockSpec((tk, fout), lambda i, k: (k, 0)),   # feature K-slice (tiny)
            pl.BlockSpec((tm, 1), lambda i, k: (i, 0)),      # dinv row slice
            pl.BlockSpec((1, fout), lambda i, k: (0, 0)),    # bias
        ],
        out_specs=pl.BlockSpec((tm, fout), lambda i, k: (i, 0)),
        scratch_shapes=[pltpu.VMEM((tm, fout), jnp.float32)],
        compiler_params=pltpu.CompilerParams(
            dimension_semantics=("parallel", "arbitrary"),   # rows across TCs on v7x
            vmem_limit_bytes=_vmem_limit_bytes()),
    )(adj_i8, xw_scaled, dinv_col, bias)


@jax.jit
def gnn_model_forward(x, edge_index, params):
    """x: [N, 2] float32 node features; edge_index: [2, E] int32."""
    w1, b1, w2, b2 = params
    n = x.shape[0]
    tm, tk, n_pad = _pick_tiling(n)

    src = edge_index[0]
    dst = edge_index[1]
    e = src.shape[0]

    # ---- glue: dense A + I built directly as int8 (kernel's streamed dtype) ----
    adj_i8 = jnp.zeros((n_pad, n_pad), jnp.int8)
    adj_i8 = adj_i8.at[dst, src].add(jnp.ones((e,), jnp.int8))

    # add_remaining_self_loops: keep pre-existing self-loop weight, add 1 only
    # where missing (mirrors the original jnp.where(diag > 0, diag, 1) logic).
    sl_count = jax.ops.segment_sum((src == dst).astype(jnp.float32), dst,
                                   num_segments=n_pad)
    idx = jnp.arange(n)
    diag = jnp.where(sl_count[:n] > 0, sl_count[:n], 1.0).astype(jnp.int8)
    adj_i8 = adj_i8.at[idx, idx].set(diag)

    # Degree from the edge list (O(E) segment_sum), not a dense O(N^2) row-sum.
    in_deg = jax.ops.segment_sum(jnp.ones((e,), jnp.float32), dst,
                                 num_segments=n_pad)
    node_mask = jnp.arange(n_pad) < n
    deg = in_deg + jnp.where((sl_count == 0) & node_mask, 1.0, 0.0)
    dinv = jnp.where(deg > 0, jax.lax.rsqrt(deg), 0.0)       # padded rows -> 0
    dinv_col = dinv.reshape(n_pad, 1)

    x_pad = jnp.zeros((n_pad, x.shape[1]), jnp.float32).at[:n].set(x)

    # ---- GCNConv(2, 16) + ReLU ---------------------------------------------
    # A_hat @ (X W1) = dinv[:,None] * ((A+I) @ (dinv[:,None] * (X W1)))
    xw1 = dinv_col * jnp.dot(x_pad, w1)                       # tiny, stays f32
    h1 = _gcn_aggregate(adj_i8, xw1, dinv_col, b1, tm=tm, tk=tk,
                        apply_relu=True)

    # dropout: identity in eval mode.

    # ---- GCNConv(16, 2) + log_softmax --------------------------------------
    hw2 = dinv_col * jnp.dot(h1, w2)
    out = _gcn_aggregate(adj_i8, hw2, dinv_col, b2, tm=tm, tk=tk,
                         apply_log_softmax=True)
    return out[:n]


def init_params(key, in_dim=2, hidden=16, out_dim=2):
    k1, k2 = jax.random.split(key)
    # Glorot-style deterministic init (synthetic weights, not a checkpoint).
    w1 = jax.random.normal(k1, (in_dim, hidden), jnp.float32) * (1.0 / jnp.sqrt(in_dim))
    b1 = jnp.zeros((1, hidden), jnp.float32)
    w2 = jax.random.normal(k2, (hidden, out_dim), jnp.float32) * (1.0 / jnp.sqrt(hidden))
    b2 = jnp.zeros((1, out_dim), jnp.float32)
    return (w1, b1, w2, b2)


if __name__ == "__main__":
    key = jax.random.PRNGKey(0)
    kx, kp = jax.random.split(key)

    # Small graph: 8 nodes, 2 input features, undirected ring edges.
    n_nodes = 8
    x = jax.random.normal(kx, (n_nodes, 2), jnp.float32)
    ring_src = jnp.arange(n_nodes, dtype=jnp.int32)
    ring_dst = (ring_src + 1) % n_nodes
    edge_index = jnp.stack(
        [jnp.concatenate([ring_src, ring_dst]),
         jnp.concatenate([ring_dst, ring_src])], axis=0)   # [2, 16] symmetric

    params = init_params(kp)

    out = gnn_model_forward(x, edge_index, params)
    out = jax.block_until_ready(out)

    # sanity: log_softmax rows should sum (in prob space) to ~1
    probs_sum = jnp.sum(jnp.exp(out), axis=1)
    assert out.shape == (n_nodes, 2)
    assert bool(jnp.all(jnp.isfinite(out)))
    assert jnp.allclose(probs_sum, jnp.ones_like(probs_sum), atol=1e-5)

    print("KERNEL_OK")
</pallas_src>

<mosaic_0001>
module attributes {stable_mosaic.version = 11 : i64} {
  func.func @_gcn_layer_kernel(%arg0: i32, %arg1: i32, %arg2: memref<32x32xi8, #tpu.memory_space<vmem>>, %arg3: memref<32x16xf32, #tpu.memory_space<vmem>>, %arg4: memref<32x1xf32, #tpu.memory_space<vmem>>, %arg5: memref<1x16xf32, #tpu.memory_space<vmem>>, %arg6: memref<32x16xf32, #tpu.memory_space<vmem>>, %arg7: memref<32x16xf32, #tpu.memory_space<vmem>>) attributes {dimension_semantics = [#tpu.dimension_semantics<parallel>, #tpu.dimension_semantics<arbitrary>], iteration_bounds = array<i64: 1, 1>, scalar_prefetch = 0 : i64, scratch_operands = 1 : i64, tpu.core_type = #tpu.core_type<tc>, window_params = [{transform_indices = @transform_0, window_bounds = array<i64: 32, 32>}, {transform_indices = @transform_1, window_bounds = array<i64: 32, 16>}, {transform_indices = @transform_2, window_bounds = array<i64: 32, 1>}, {pipeline_mode = #tpu.pipeline_mode<synchronous>, transform_indices = @transform_3, window_bounds = array<i64: 1, 16>}, {transform_indices = @transform_4, window_bounds = array<i64: 32, 16>}]} {
    %c0_i32 = arith.constant 0 : i32
    %0 = arith.cmpi eq, %arg1, %c0_i32 : i32
    %1 = arith.extui %0 : i1 to i32
    %c0_i32_0 = arith.constant 0 : i32
    %2 = arith.cmpi ne, %1, %c0_i32_0 : i32
    scf.if %2 {
      %cst_10 = arith.constant 0.000000e+00 : f32
      %13 = vector.broadcast %cst_10 : f32 to vector<32x16xf32>
      %c0_11 = arith.constant 0 : index
      %c0_12 = arith.constant 0 : index
      %14 = vector.load %arg7[%c0_11, %c0_12] : memref<32x16xf32, #tpu.memory_space<vmem>>, vector<32x16xf32>
      tpu.vector_store %arg7[%c0_11, %c0_12], %13 {strides = array<i32>} : memref<32x16xf32, #tpu.memory_space<vmem>>, vector<32x16xf32>,
    } else {
    }
    %c0 = arith.constant 0 : index
    %c0_1 = arith.constant 0 : index
    %3 = vector.load %arg2[%c0, %c0_1] : memref<32x32xi8, #tpu.memory_space<vmem>>, vector<32x32xi8>
    %4 = arith.sitofp %3 : vector<32x32xi8> to vector<32x32xf32>
    %c0_2 = arith.constant 0 : index
    %c0_3 = arith.constant 0 : index
    %5 = vector.load %arg7[%c0_2, %c0_3] : memref<32x16xf32, #tpu.memory_space<vmem>>, vector<32x16xf32>
    %c0_4 = arith.constant 0 : index
    %c0_5 = arith.constant 0 : index
    %6 = vector.load %arg3[%c0_4, %c0_5] : memref<32x16xf32, #tpu.memory_space<vmem>>, vector<32x16xf32>
    %cst = arith.constant dense<0.000000e+00> : vector<32x16xf32>
    %7 = tpu.matmul %4, %6, %cst {dimension_numbers = #tpu.dot_dimension_numbers<[1], [0], [0], [1], [0, 0, 1, 1], [], []>} : vector<32x32xf32>, vector<32x16xf32>, vector<32x16xf32> -> vector<32x16xf32>
    %8 = arith.addf %5, %7 : vector<32x16xf32>
    %c0_6 = arith.constant 0 : index
    %c0_7 = arith.constant 0 : index
    %9 = vector.load %arg7[%c0_6, %c0_7] : memref<32x16xf32, #tpu.memory_space<vmem>>, vector<32x16xf32>
    tpu.vector_store %arg7[%c0_6, %c0_7], %8 {strides = array<i32>} : memref<32x16xf32, #tpu.memory_space<vmem>>, vector<32x16xf32>,
    %c0_i32_8 = arith.constant 0 : i32
    %10 = arith.cmpi eq, %arg1, %c0_i32_8 : i32
    %11 = arith.extui %10 : i1 to i32
    %c0_i32_9 = arith.constant 0 : i32
    %12 = arith.cmpi ne, %11, %c0_i32_9 : i32
    scf.if %12 {
      %c0_10 = arith.constant 0 : index
      %c0_11 = arith.constant 0 : index
      %13 = vector.load %arg4[%c0_10, %c0_11] : memref<32x1xf32, #tpu.memory_space<vmem>>, vector<32x1xf32>
      %c0_12 = arith.constant 0 : index
      %c0_13 = arith.constant 0 : index
      %14 = vector.load %arg7[%c0_12, %c0_13] : memref<32x16xf32, #tpu.memory_space<vmem>>, vector<32x16xf32>
      %15 = vector.broadcast %13 : vector<32x1xf32> to vector<32x16xf32>
      %16 = arith.mulf %15, %14 : vector<32x16xf32>
      %c0_14 = arith.constant 0 : index
      %c0_15 = arith.constant 0 : index
      %17 = vector.load %arg5[%c0_14, %c0_15] : memref<1x16xf32, #tpu.memory_space<vmem>>, vector<1x16xf32>
      %18 = vector.broadcast %17 : vector<1x16xf32> to vector<32x16xf32>
      %19 = arith.addf %16, %18 : vector<32x16xf32>
      %cst_16 = arith.constant 0.000000e+00 : f32
      %20 = vector.broadcast %cst_16 : f32 to vector<32x16xf32>
      %21 = arith.maximumf %19, %20 : vector<32x16xf32>
      %c0_17 = arith.constant 0 : index
      %c0_18 = arith.constant 0 : index
      %22 = vector.load %arg6[%c0_17, %c0_18] : memref<32x16xf32, #tpu.memory_space<vmem>>, vector<32x16xf32>
      tpu.vector_store %arg6[%c0_17, %c0_18], %21 {strides = array<i32>} : memref<32x16xf32, #tpu.memory_space<vmem>>, vector<32x16xf32>,
    } else {
    }
    return
  }
  func.func @transform_0(%arg0: i32, %arg1: i32) -> (i32, i32) {
    %c0_i32 = arith.constant 0 : i32
    return %arg0, %arg1 : i32, i32
  }
  func.func @transform_1(%arg0: i32, %arg1: i32) -> (i32, i32) {
    %c0_i32 = arith.constant 0 : i32
    %c0_i32_0 = arith.constant 0 : i32
    return %arg1, %c0_i32 : i32, i32
  }
  func.func @transform_2(%arg0: i32, %arg1: i32) -> (i32, i32) {
    %c0_i32 = arith.constant 0 : i32
    %c0_i32_0 = arith.constant 0 : i32
    return %arg0, %c0_i32 : i32, i32
  }
  func.func @transform_3(%arg0: i32, %arg1: i32) -> (i32, i32) {
    %c0_i32 = arith.constant 0 : i32
    %c0_i32_0 = arith.constant 0 : i32
    %c0_i32_1 = arith.constant 0 : i32
    return %c0_i32, %c0_i32_0 : i32, i32
  }
  func.func @transform_4(%arg0: i32, %arg1: i32) -> (i32, i32) {
    %c0_i32 = arith.constant 0 : i32
    %c0_i32_0 = arith.constant 0 : i32
    return %arg0, %c0_i32 : i32, i32
  }
}

module attributes {stable_mosaic.version = 11 : i64} {
  func.func @_gcn_layer_kernel(%arg0: i32, %arg1: i32, %arg2: memref<32x32xi8, #tpu.memory_space<vmem>>, %arg3: memref<32x2xf32, #tpu.memory_space<vmem>>, %arg4: memref<32x1xf32, #tpu.memory_space<vmem>>, %arg5: memref<1x2xf32, #tpu.memory_space<vmem>>, %arg6: memref<32x2xf32, #tpu.memory_space<vmem>>, %arg7: memref<32x2xf32, #tpu.memory_space<vmem>>) attributes {dimension_semantics = [#tpu.dimension_semantics<parallel>, #tpu.dimension_semantics<arbitrary>], iteration_bounds = array<i64: 1, 1>, scalar_prefetch = 0 : i64, scratch_operands = 1 : i64, tpu.core_type = #tpu.core_type<tc>, window_params = [{transform_indices = @transform_0, window_bounds = array<i64: 32, 32>}, {transform_indices = @transform_1, window_bounds = array<i64: 32, 2>}, {transform_indices = @transform_2, window_bounds = array<i64: 32, 1>}, {pipeline_mode = #tpu.pipeline_mode<synchronous>, transform_indices = @transform_3, window_bounds = array<i64: 1, 2>}, {transform_indices = @transform_4, window_bounds = array<i64: 32, 2>}]} {
    %c0_i32 = arith.constant 0 : i32
    %0 = arith.cmpi eq, %arg1, %c0_i32 : i32
    %1 = arith.extui %0 : i1 to i32
    %c0_i32_0 = arith.constant 0 : i32
    %2 = arith.cmpi ne, %1, %c0_i32_0 : i32
    scf.if %2 {
      %cst_10 = arith.constant 0.000000e+00 : f32
      %13 = vector.broadcast %cst_10 : f32 to vector<32x2xf32>
      %c0_11 = arith.constant 0 : index
      %c0_12 = arith.constant 0 : index
      %14 = vector.load %arg7[%c0_11, %c0_12] : memref<32x2xf32, #tpu.memory_space<vmem>>, vector<32x2xf32>
      tpu.vector_store %arg7[%c0_11, %c0_12], %13 {strides = array<i32>} : memref<32x2xf32, #tpu.memory_space<vmem>>, vector<32x2xf32>,
    } else {
    }
    %c0 = arith.constant 0 : index
    %c0_1 = arith.constant 0 : index
    %3 = vector.load %arg2[%c0, %c0_1] : memref<32x32xi8, #tpu.memory_space<vmem>>, vector<32x32xi8>
    %4 = arith.sitofp %3 : vector<32x32xi8> to vector<32x32xf32>
    %c0_2 = arith.constant 0 : index
    %c0_3 = arith.constant 0 : index
    %5 = vector.load %arg7[%c0_2, %c0_3] : memref<32x2xf32, #tpu.memory_space<vmem>>, vector<32x2xf32>
    %c0_4 = arith.constant 0 : index
    %c0_5 = arith.constant 0 : index
    %6 = vector.load %arg3[%c0_4, %c0_5] : memref<32x2xf32, #tpu.memory_space<vmem>>, vector<32x2xf32>
    %cst = arith.constant dense<0.000000e+00> : vector<32x2xf32>
    %7 = tpu.matmul %4, %6, %cst {dimension_numbers = #tpu.dot_dimension_numbers<[1], [0], [0], [1], [0, 0, 1, 1], [], []>} : vector<32x32xf32>, vector<32x2xf32>, vector<32x2xf32> -> vector<32x2xf32>
    %8 = arith.addf %5, %7 : vector<32x2xf32>
    %c0_6 = arith.constant 0 : index
    %c0_7 = arith.constant 0 : index
    %9 = vector.load %arg7[%c0_6, %c0_7] : memref<32x2xf32, #tpu.memory_space<vmem>>, vector<32x2xf32>
    tpu.vector_store %arg7[%c0_6, %c0_7], %8 {strides = array<i32>} : memref<32x2xf32, #tpu.memory_space<vmem>>, vector<32x2xf32>,
    %c0_i32_8 = arith.constant 0 : i32
    %10 = arith.cmpi eq, %arg1, %c0_i32_8 : i32
    %11 = arith.extui %10 : i1 to i32
    %c0_i32_9 = arith.constant 0 : i32
    %12 = arith.cmpi ne, %11, %c0_i32_9 : i32
    scf.if %12 {
      %c0_10 = arith.constant 0 : index
      %c0_11 = arith.constant 0 : index
      %13 = vector.load %arg4[%c0_10, %c0_11] : memref<32x1xf32, #tpu.memory_space<vmem>>, vector<32x1xf32>
      %c0_12 = arith.constant 0 : index
      %c0_13 = arith.constant 0 : index
      %14 = vector.load %arg7[%c0_12, %c0_13] : memref<32x2xf32, #tpu.memory_space<vmem>>, vector<32x2xf32>
      %15 = vector.broadcast %13 : vector<32x1xf32> to vector<32x2xf32>
      %16 = arith.mulf %15, %14 : vector<32x2xf32>
      %c0_14 = arith.constant 0 : index
      %c0_15 = arith.constant 0 : index
      %17 = vector.load %arg5[%c0_14, %c0_15] : memref<1x2xf32, #tpu.memory_space<vmem>>, vector<1x2xf32>
      %18 = vector.broadcast %17 : vector<1x2xf32> to vector<32x2xf32>
      %19 = arith.addf %16, %18 : vector<32x2xf32>
      %cst_16 = arith.constant dense<0xFF800000> : vector<32xf32>
      %20 = vector.multi_reduction <maximumf>, %19, %cst_16 [1] : vector<32x2xf32> to vector<32xf32>
      %21 = vector.shape_cast %20 : vector<32xf32> to vector<32x1xf32>
      %22 = vector.broadcast %21 : vector<32x1xf32> to vector<32x2xf32>
      %23 = arith.subf %19, %22 : vector<32x2xf32>
      %24 = math.exp %23 : vector<32x2xf32>
      %cst_17 = arith.constant dense<0.000000e+00> : vector<32xf32>
      %25 = vector.multi_reduction <add>, %24, %cst_17 [1] : vector<32x2xf32> to vector<32xf32>
      %26 = vector.shape_cast %25 : vector<32xf32> to vector<32x1xf32>
      %27 = math.log %26 : vector<32x1xf32>
      %28 = vector.broadcast %27 : vector<32x1xf32> to vector<32x2xf32>
      %29 = arith.subf %23, %28 : vector<32x2xf32>
      %c0_18 = arith.constant 0 : index
      %c0_19 = arith.constant 0 : index
      %30 = vector.load %arg6[%c0_18, %c0_19] : memref<32x2xf32, #tpu.memory_space<vmem>>, vector<32x2xf32>
      tpu.vector_store %arg6[%c0_18, %c0_19], %29 {strides = array<i32>} : memref<32x2xf32, #tpu.memory_space<vmem>>, vector<32x2xf32>,
    } else {
    }
    return
  }
  func.func @transform_0(%arg0: i32, %arg1: i32) -> (i32, i32) {
    %c0_i32 = arith.constant 0 : i32
    return %arg0, %arg1 : i32, i32
  }
  func.func @transform_1(%arg0: i32, %arg1: i32) -> (i32, i32) {
    %c0_i32 = arith.constant 0 : i32
    %c0_i32_0 = arith.constant 0 : i32
    return %arg1, %c0_i32 : i32, i32
  }
  func.func @transform_2(%arg0: i32, %arg1: i32) -> (i32, i32) {
    %c0_i32 = arith.constant 0 : i32
    %c0_i32_0 = arith.constant 0 : i32
    return %arg0, %c0_i32 : i32, i32
  }
  func.func @transform_3(%arg0: i32, %arg1: i32) -> (i32, i32) {
    %c0_i32 = arith.constant 0 : i32
    %c0_i32_0 = arith.constant 0 : i32
    %c0_i32_1 = arith.constant 0 : i32
    return %c0_i32, %c0_i32_0 : i32, i32
  }
  func.func @transform_4(%arg0: i32, %arg1: i32) -> (i32, i32) {
    %c0_i32 = arith.constant 0 : i32
    %c0_i32_0 = arith.constant 0 : i32
    return %arg0, %c0_i32 : i32, i32
  }
}

</mosaic_0001>

<bundles_post_ra>
// kernel: gnn_model_forward.2
= control target key start
LH: loop header
LB: loop body
LE: loop exit
PB: predicated region body
PF: predicated region fallthrough
CT: control target
= control target key end

     0   :  { %v182_v2 = vmov 0   ;;  %vm46_vm0 = vcmask 261120   ;;  %vm21_vm1 = vcmask 130048   ;;  %v183_v18 = vmov 0.0   ;;  %s263_s1 = inlined_call_operand.vmem [shape: f32[32,16], index: 1, kind: input, shape index: {}]   ;;  %s264_s0 = inlined_call_operand.vmem [shape: s8[32,32], index: 0, kind: input, shape index: {}]   ;;  %s265_s2 = inlined_call_operand.vmem [shape: f32[32,1], index: 2, kind: input, shape index: {}]   ;;  %s266_s3 = inlined_call_operand.vmem [shape: f32[1,16], index: 3, kind: input, shape index: {}]   ;;  %s267_s4 = inlined_call_operand.vmem [shape: f32[32,16], index: 4, kind: output, shape index: {}]  }
   0x1   :  { %v45_v0 = vld [vmem:[%s263_s1 + $0x18] sm:$0xff]  ;;  %v44_v1 = vld [vmem:[%s263_s1 + $0x10] sm:$0xff]  ;;  %180 = vset.pattern.permute.xlu1 %v182_v2  ;;  %179 = vset.pattern.permute.xlu0 %v182_v2  ;;  %v157_v3 = vld [vmem:[%s264_s0] sm:$0xff]   ;;  %22 = vst.msk [vmem:[#allocation2] sm:$0xff] %vm21_vm1, %v183_v18 }
   0x2   :  { %71 = vmatpush.msra.mxu0 %v45_v0  ;;  %164 = vmatpush.msra.mxu1 %v45_v0  ;;  %v43_v4 = vld [vmem:[%s263_s1 + $0x8] sm:$0xff]  ;;  %v158_v5 = vunpack.c.0.s8 %v157_v3  ;;  %v159_v6 = vunpack.c.1.s8 %v157_v3  ;;  %v162_v7 = vunpack.c.2.s8 %v157_v3  ;;  %v163_v8 = vunpack.c.3.s8 %v157_v3  ;;  %v42_v9 = vld [vmem:[%s263_s1] sm:$0xff]  ;;  %v102_v14 = vld [vmem:[%s265_s2 + $0x10] sm:$0xff]  ;;  %23 = vst.msk [vmem:[#allocation2 + $0x8] sm:$0xff] %vm21_vm1, %v183_v18 }
   0x3   :  { %165 = vmatpush.msra.mxu2 %v45_v0  ;;  %166 = vmatpush.msra.mxu3 %v45_v0  ;;  %v100_v15 = vld [vmem:[%s265_s2] sm:$0xff]  ;;  %v103_v16 = vld [vmem:[%s265_s2 + $0x18] sm:$0xff]  ;;  %v101_v17 = vld [vmem:[%s265_s2 + $0x8] sm:$0xff]  ;;  %24 = vst.msk [vmem:[#allocation2 + $0x10] sm:$0xff] %vm21_vm1, %v183_v18 }
   0x4   :  { %72 = vmatpush.msra.mxu0 %v44_v1  ;;  %167 = vmatpush.msra.mxu1 %v44_v1  ;;  %v34_v10 = vcvt.s32.f32 %v158_v5  ;;  %v35_v11 = vcvt.s32.f32 %v159_v6  ;;  %v36_v12 = vcvt.s32.f32 %v162_v7  ;;  %v37_v13 = vcvt.s32.f32 %v163_v8  ;;  %25 = vst.msk [vmem:[#allocation2 + $0x18] sm:$0xff] %vm21_vm1, %v183_v18  ;;  %v181_v33 = vld [vmem:[%s266_s3] ss:$0 sm:$0xff] }
   0x5   :  { %168 = vmatpush.msra.mxu2 %v44_v1  ;;  %169 = vmatpush.msra.mxu3 %v44_v1 }
   0x6   :  { %73 = vmatpush.msra.mxu0 %v43_v4  ;;  %170 = vmatpush.msra.mxu1 %v43_v4 }
   0x7   :  { %171 = vmatpush.msra.mxu2 %v43_v4  ;;  %172 = vmatpush.msra.mxu3 %v43_v4 }
   0x8   :  { %74 = vmatpush.msra.mxu0 %v42_v9  ;;  %173 = vmatpush.msra.mxu1 %v42_v9  ;;  %v38_v19 = vld [vmem:[#allocation2] sm:$0xff] }
   0x9   :  { %174 = vmatpush.msra.mxu2 %v42_v9  ;;  %175 = vmatpush.msra.mxu3 %v42_v9  ;;  %v39_v20 = vld [vmem:[#allocation2 + $0x8] sm:$0xff] }
   0xa   :  { %152 = vmatmul.msk.f32.vlgmr.msra.gmra.mxu0 %vm46_vm0, %v34_v10  ;;  %153 = vmatmul.msk.f32.vlgmr.msra.gmra.mxu1 %vm46_vm0, %v35_v11  ;;  %v40_v26 = vld [vmem:[#allocation2 + $0x10] sm:$0xff] }
   0xb   :  { %154 = vmatmul.msk.f32.vlgmr.msra.gmra.mxu2 %vm46_vm0, %v36_v12  ;;  %155 = vmatmul.msk.f32.vlgmr.msra.gmra.mxu3 %vm46_vm0, %v37_v13  ;;  %v41_v27 = vld [vmem:[#allocation2 + $0x18] sm:$0xff] }
   0xc   :  { %120 = vperm.xlu1 %180, %v102_v14   ;;  %110 = vperm.xlu0 %179, %v100_v15  }
  0x14   :  { %125 = vperm.xlu1 %180, %v103_v16   ;;  %115 = vperm.xlu0 %179, %v101_v17  }
  0x7e   :  { %v111_v23 = vpop.permute.xlu0 %110  ;;  %v121_v30 = vpop.permute.xlu1 %120 }
  0x86   :  { %v116_v36 = vpop.permute.xlu0 %115  ;;  %v126_v44 = vpop.permute.xlu1 %125 }
  0x87   :  { %v76_v21 = vpop.f32.mrf.mxu0  ;;  %v79_v22 = vpop.f32.mrf.mxu1 }
  0x88   :  { %v88_v24 = vadd.f32 %v76_v21, %v38_v19  ;;  %v89_v25 = vadd.f32 %v79_v22, %v39_v20 }
  0x8a   :  { %93 = vst.msk [vmem:[#allocation2] sm:$0xff] %vm21_vm1, %v88_v24 }
  0x8b   :  { %94 = vst.msk [vmem:[#allocation2 + $0x8] sm:$0xff] %vm21_vm1, %v89_v25 }
  0x8e   :  { %v82_v28 = vpop.f32.mrf.mxu2  ;;  %v85_v29 = vpop.f32.mrf.mxu3 }
  0x8f   :  { %v90_v31 = vadd.f32 %v82_v28, %v40_v26  ;;  %v91_v32 = vadd.f32 %v85_v29, %v41_v27 }
  0x91   :  { %95 = vst.msk [vmem:[#allocation2 + $0x10] sm:$0xff] %vm21_vm1, %v90_v31  ;;  %v104_v34 = vld [vmem:[#allocation2] sm:$0xff] }
  0x92   :  { %96 = vst.msk [vmem:[#allocation2 + $0x18] sm:$0xff] %vm21_vm1, %v91_v32  ;;  %v128_v35 = vmul.f32 %v111_v23, %v104_v34  ;;  %v105_v37 = vld [vmem:[#allocation2 + $0x8] sm:$0xff] }
  0x93   :  { %v129_v38 = vmul.f32 %v116_v36, %v105_v37 }
  0x94   :  { %v136_v39 = vadd.f32 %v181_v33, %v128_v35 }
  0x95   :  { %v137_v40 = vadd.f32 %v181_v33, %v129_v38 }
  0x96   :  { %v140_v41 = vmax.f32 %v136_v39, 0.0 }
  0x97   :  { %v141_v42 = vmax.f32 %v137_v40, 0.0 }
  0x98   :  { %v106_v43 = vld [vmem:[#allocation2 + $0x10] sm:$0xff]  ;;  %144 = vst.msk [vmem:[%s267_s4] sm:$0xff] %vm21_vm1, %v140_v41 }
  0x99   :  { %v107_v45 = vld [vmem:[#allocation2 + $0x18] sm:$0xff]  ;;  %v130_v46 = vmul.f32 %v121_v30, %v106_v43  ;;  %145 = vst.msk [vmem:[%s267_s4 + $0x8] sm:$0xff] %vm21_vm1, %v141_v42 }
  0x9a   :  { %v131_v47 = vmul.f32 %v126_v44, %v107_v45 }
  0x9b   :  { %v138_v48 = vadd.f32 %v181_v33, %v130_v46 }
  0x9c   :  { %v139_v49 = vadd.f32 %v181_v33, %v131_v47 }
  0x9d   :  { %v142_v50 = vmax.f32 %v138_v48, 0.0 }
  0x9e   :  { %v143_v51 = vmax.f32 %v139_v49, 0.0 }
  0x9f   :  { %146 = vst.msk [vmem:[%s267_s4 + $0x10] sm:$0xff] %vm21_vm1, %v142_v50 }
  0xa0   :  { %147 = vst.msk [vmem:[%s267_s4 + $0x18] sm:$0xff] %vm21_vm1, %v143_v51 }

// kernel: gnn_model_forward.3
= control target key start
LH: loop header
LB: loop body
LE: loop exit
PB: predicated region body
PF: predicated region fallthrough
CT: control target
= control target key end

     0   :  { %vm21_vm0 = vcmask 15360   ;;  %v242_v2 = vmov 0   ;;  %v243_v3 = vmov 0.0   ;;  %vm46_vm1 = vcmask 261120   ;;  %s331_s1 = inlined_call_operand.vmem [shape: f32[32,2], index: 1, kind: input, shape index: {}]   ;;  %s332_s0 = inlined_call_operand.vmem [shape: s8[32,32], index: 0, kind: input, shape index: {}]   ;;  %s333_s2 = inlined_call_operand.vmem [shape: f32[32,1], index: 2, kind: input, shape index: {}]   ;;  %s334_s3 = inlined_call_operand.vmem [shape: f32[1,2], index: 3, kind: input, shape index: {}]   ;;  %s335_s4 = inlined_call_operand.vmem [shape: f32[32,2], index: 4, kind: output, shape index: {}]  }
   0x1   :  { %v45_v0 = vld [vmem:[%s331_s1 + $0x18] sm:$0xff]  ;;  %v44_v1 = vld [vmem:[%s331_s1 + $0x10] sm:$0xff]  ;;  %223 = vset.pattern.permute.xlu0 %v242_v2  ;;  %224 = vset.pattern.permute.xlu1 %v242_v2  ;;  %22 = vst.msk [vmem:[#allocation2] sm:$0xff] %vm21_vm0, %v243_v3  ;;  %v201_v4 = vld [vmem:[%s332_s0] sm:$0xff]  }
   0x2   :  { %71 = vmatpush.msra.mxu0 %v45_v0  ;;  %208 = vmatpush.msra.mxu1 %v45_v0  ;;  %23 = vst.msk [vmem:[#allocation2 + $0x8] sm:$0xff] %vm21_vm0, %v243_v3  ;;  %v43_v5 = vld [vmem:[%s331_s1 + $0x8] sm:$0xff]  ;;  %v202_v6 = vunpack.c.0.s8 %v201_v4  ;;  %v203_v7 = vunpack.c.1.s8 %v201_v4  ;;  %v206_v8 = vunpack.c.2.s8 %v201_v4  ;;  %v207_v9 = vunpack.c.3.s8 %v201_v4  ;;  %v42_v10 = vld [vmem:[%s331_s1] sm:$0xff]  ;;  %v102_v16 = vld [vmem:[%s333_s2 + $0x10] sm:$0xff] }
   0x3   :  { %209 = vmatpush.msra.mxu2 %v45_v0  ;;  %210 = vmatpush.msra.mxu3 %v45_v0  ;;  %24 = vst.msk [vmem:[#allocation2 + $0x10] sm:$0xff] %vm21_vm0, %v243_v3  ;;  %v100_v15 = vld [vmem:[%s333_s2] sm:$0xff]  ;;  %v101_v17 = vld [vmem:[%s333_s2 + $0x8] sm:$0xff]  ;;  %v103_v18 = vld [vmem:[%s333_s2 + $0x18] sm:$0xff] }
   0x4   :  { %72 = vmatpush.msra.mxu0 %v44_v1  ;;  %211 = vmatpush.msra.mxu1 %v44_v1  ;;  %25 = vst.msk [vmem:[#allocation2 + $0x18] sm:$0xff] %vm21_vm0, %v243_v3  ;;  %v34_v11 = vcvt.s32.f32 %v202_v6  ;;  %v35_v12 = vcvt.s32.f32 %v203_v7  ;;  %v36_v13 = vcvt.s32.f32 %v206_v8  ;;  %v37_v14 = vcvt.s32.f32 %v207_v9  ;;  %v225_v33 = vld [vmem:[%s334_s3] ss:$0 sm:$0xff] }
   0x5   :  { %212 = vmatpush.msra.mxu2 %v44_v1  ;;  %213 = vmatpush.msra.mxu3 %v44_v1 }
   0x6   :  { %73 = vmatpush.msra.mxu0 %v43_v5  ;;  %214 = vmatpush.msra.mxu1 %v43_v5 }
   0x7   :  { %215 = vmatpush.msra.mxu2 %v43_v5  ;;  %216 = vmatpush.msra.mxu3 %v43_v5 }
   0x8   :  { %74 = vmatpush.msra.mxu0 %v42_v10  ;;  %217 = vmatpush.msra.mxu1 %v42_v10  ;;  %v38_v19 = vld [vmem:[#allocation2] sm:$0xff] }
   0x9   :  { %218 = vmatpush.msra.mxu2 %v42_v10  ;;  %219 = vmatpush.msra.mxu3 %v42_v10  ;;  %v39_v20 = vld [vmem:[#allocation2 + $0x8] sm:$0xff] }
   0xa   :  { %196 = vmatmul.msk.f32.vlgmr.msra.gmra.mxu0 %vm46_vm1, %v34_v11  ;;  %197 = vmatmul.msk.f32.vlgmr.msra.gmra.mxu1 %vm46_vm1, %v35_v12  ;;  %v40_v26 = vld [vmem:[#allocation2 + $0x10] sm:$0xff] }
   0xb   :  { %198 = vmatmul.msk.f32.vlgmr.msra.gmra.mxu2 %vm46_vm1, %v36_v13  ;;  %199 = vmatmul.msk.f32.vlgmr.msra.gmra.mxu3 %vm46_vm1, %v37_v14  ;;  %v41_v27 = vld [vmem:[#allocation2 + $0x18] sm:$0xff] }
   0xc   :  { %110 = vperm.xlu0 %223, %v100_v15   ;;  %120 = vperm.xlu1 %224, %v102_v16  }
  0x14   :  { %115 = vperm.xlu0 %223, %v101_v17   ;;  %125 = vperm.xlu1 %224, %v103_v18  }
  0x7e   :  { %v111_v25 = vpop.permute.xlu0 %110  ;;  %v121_v28 = vpop.permute.xlu1 %120 }
  0x86   :  { %v116_v36 = vpop.permute.xlu0 %115  ;;  %v126_v41 = vpop.permute.xlu1 %125 }
  0x87   :  { %v76_v21 = vpop.f32.mrf.mxu0  ;;  %v79_v22 = vpop.f32.mrf.mxu1 }
  0x88   :  { %v88_v23 = vadd.f32 %v76_v21, %v38_v19  ;;  %v89_v24 = vadd.f32 %v79_v22, %v39_v20 }
  0x8a   :  { %93 = vst.msk [vmem:[#allocation2] sm:$0xff] %vm21_vm0, %v88_v23 }
  0x8b   :  { %94 = vst.msk [vmem:[#allocation2 + $0x8] sm:$0xff] %vm21_vm0, %v89_v24 }
  0x8e   :  { %v82_v29 = vpop.f32.mrf.mxu2  ;;  %v85_v30 = vpop.f32.mrf.mxu3 }
  0x8f   :  { %v90_v31 = vadd.f32 %v82_v29, %v40_v26  ;;  %v91_v32 = vadd.f32 %v85_v30, %v41_v27 }
  0x91   :  { %v104_v34 = vld [vmem:[#allocation2] sm:$0xff]  ;;  %95 = vst.msk [vmem:[#allocation2 + $0x10] sm:$0xff] %vm21_vm0, %v90_v31 }
  0x92   :  { %v128_v35 = vmul.f32 %v111_v25, %v104_v34  ;;  %96 = vst.msk [vmem:[#allocation2 + $0x18] sm:$0xff] %vm21_vm0, %v91_v32  ;;  %v105_v37 = vld [vmem:[#allocation2 + $0x8] sm:$0xff] }
  0x93   :  { %v129_v39 = vmul.f32 %v116_v36, %v105_v37 }
  0x94   :  { %v136_v38 = vadd.f32 %v225_v33, %v128_v35 }
  0x95   :  { %v137_v46 = vadd.f32 %v225_v33, %v129_v39 }
  0x96   :  { %v140_v40 = vsel %vm21_vm0, %v136_v38, -inf }
  0x97   :  { %141 = vmax.xlane.f32.xlu2 %v140_v40  ;;  %v143_v51 = vsel %vm21_vm0, %v137_v46, -inf }
  0x98   :  { %v106_v42 = vld [vmem:[#allocation2 + $0x10] sm:$0xff] }
  0x99   :  { %v130_v43 = vmul.f32 %v121_v28, %v106_v42  ;;  %v107_v44 = vld [vmem:[#allocation2 + $0x18] sm:$0xff] }
  0x9a   :  { %v131_v45 = vmul.f32 %v126_v41, %v107_v44 }
  0x9b   :  { %v138_v47 = vadd.f32 %v225_v33, %v130_v43 }
  0x9c   :  { %v139_v48 = vadd.f32 %v225_v33, %v131_v45 }
  0x9d   :  { %v146_v49 = vsel %vm21_vm0, %v138_v47, -inf }
  0x9e   :  { %v149_v50 = vsel %vm21_vm0, %v139_v48, -inf  ;;  %147 = vmax.xlane.f32.xlu0 %v146_v49 }
  0x9f   :  { %150 = vmax.xlane.f32.xlu1 %v149_v50  ;;  %144 = vmax.xlane.f32.xlu2 %v143_v51 }
 0x10a   :  { %v142_v52 = vpop.xlane.xlu2 %141 }
 0x10b   :  { %v152_v53 = vsub.f32 %v136_v38, %v142_v52 }
 0x10d   :  { %v156_v54 = vmul.f32 1.442695, %v152_v53 }
 0x10f   :  { %226 = vpow2.f32 %v156_v54 }
 0x111   :  { %v148_v56 = vpop.xlane.xlu0 %147 }
 0x112   :  { %v145_v55 = vpop.xlane.xlu2 %144  ;;  %v154_v60 = vsub.f32 %v138_v47, %v148_v56  ;;  %v151_v63 = vpop.xlane.xlu1 %150 }
 0x113   :  { %v153_v57 = vsub.f32 %v137_v46, %v145_v55  ;;  %v155_v1 = vsub.f32 %v139_v48, %v151_v63 }
 0x114   :  { %v160_v62 = vmul.f32 1.442695, %v154_v60 }
 0x115   :  { %v227_v58 = vpop.eup %226  ;;  %v158_v59 = vmul.f32 1.442695, %v153_v57  ;;  %v162_v3 = vmul.f32 1.442695, %v155_v1 }
 0x116   :  { %v164_v61 = vsel %vm21_vm0, %v227_v58, 0.0 }
 0x117   :  { %165 = vadd.xlane.f32.xlu2 %v164_v61  ;;  %228 = vpow2.f32 %v158_v59 }
 0x118   :  { %230 = vpow2.f32 %v160_v62 }
 0x119   :  { %232 = vpow2.f32 %v162_v3 }
 0x11d   :  { %v229_v0 = vpop.eup %228 }
 0x11e   :  { %v167_v2 = vsel %vm21_vm0, %v229_v0, 0.0  ;;  %v231_v4 = vpop.eup %230 }
 0x11f   :  { %168 = vadd.xlane.f32.xlu2 %v167_v2  ;;  %v170_v5 = vsel %vm21_vm0, %v231_v4, 0.0  ;;  %v233_v6 = vpop.eup %232 }
 0x120   :  { %v173_v7 = vsel %vm21_vm0, %v233_v6, 0.0 }
 0x127   :  { %171 = vadd.xlane.f32.xlu2 %v170_v5 }
 0x12f   :  { %174 = vadd.xlane.f32.xlu2 %v173_v7 }
 0x18a   :  { %v166_v8 = vpop.xlane.xlu2 %165 }
 0x18b   :  { %234 = vlog2.f32 %v166_v8 }
 0x191   :  { %v235_v9 = vpop.eup %234 }
 0x192   :  { %v177_v10 = vmul.f32 0.6931472, %v235_v9  ;;  %v169_v11 = vpop.xlane.xlu2 %168 }
 0x193   :  { %236 = vlog2.f32 %v169_v11 }
 0x194   :  { %v184_v12 = vsub.f32 %v152_v53, %v177_v10 }
 0x196   :  { %188 = vst.msk [vmem:[%s335_s4] sm:$0xff] %vm21_vm0, %v184_v12 }
 0x199   :  { %v237_v13 = vpop.eup %236 }
 0x19a   :  { %v179_v14 = vmul.f32 0.6931472, %v237_v13  ;;  %v172_v15 = vpop.xlane.xlu2 %171 }
 0x19b   :  { %238 = vlog2.f32 %v172_v15 }
 0x19c   :  { %v185_v16 = vsub.f32 %v153_v57, %v179_v14 }
 0x19e   :  { %189 = vst.msk [vmem:[%s335_s4 + $0x8] sm:$0xff] %vm21_vm0, %v185_v16 }
 0x1a1   :  { %v239_v17 = vpop.eup %238 }
 0x1a2   :  { %v181_v18 = vmul.f32 0.6931472, %v239_v17  ;;  %v175_v19 = vpop.xlane.xlu2 %174 }
 0x1a3   :  { %240 = vlog2.f32 %v175_v19 }
 0x1a4   :  { %v186_v20 = vsub.f32 %v154_v60, %v181_v18 }
 0x1a6   :  { %190 = vst.msk [vmem:[%s335_s4 + $0x10] sm:$0xff] %vm21_vm0, %v186_v20 }
 0x1a9   :  { %v241_v21 = vpop.eup %240 }
 0x1aa   :  { %v183_v22 = vmul.f32 0.6931472, %v241_v21 }
 0x1ac   :  { %v187_v23 = vsub.f32 %v155_v1, %v183_v22 }
 0x1ae   :  { %191 = vst.msk [vmem:[%s335_s4 + $0x18] sm:$0xff] %vm21_vm0, %v187_v23 }

</bundles_post_ra>
